<compile_context>
chip_gen: v5e
topology: v5e:2x2
jax: 0.10.0
libtpu: 0.0.40
codegen_flags: <defaults>
</compile_context>

<pallas_src>
import jax
import jax.numpy as jnp
from jax.experimental import pallas as pl
from jax.experimental.pallas import tpu as pltpu

LOG_EPS = -6.0   # clamp floor used by the reference KL_gaussians regularizer
LANES = 128
_FOLD = 8        # sublane height of the per-block partial-sum slab


def _kl_loss_kernel(mu_q_ref, logs_q_ref, mu_p_ref, logs_p_ref,
                    kl_part_ref, reg_part_ref):
    mu_q = mu_q_ref[...].astype(jnp.float32)
    logs_q = logs_q_ref[...].astype(jnp.float32)
    mu_p = mu_p_ref[...].astype(jnp.float32)
    logs_p = logs_p_ref[...].astype(jnp.float32)

    diff = mu_q - mu_p
    kl = (logs_p - logs_q) \
        + 0.5 * (jnp.exp(2.0 * logs_q) + diff * diff) * jnp.exp(-2.0 * logs_p) - 0.5
    reg_d = jnp.maximum(logs_q, LOG_EPS) - jnp.maximum(logs_p, LOG_EPS)
    reg = reg_d * reg_d

    tr = kl.shape[0]
    # (tr,128) -> (tr//8, 8, 128) keeps the (8,128) vreg tiling, so the axis-0 sum is
    # pure VPU vreg adds (no per-step cross-lane/XLU reduction, no SMEM crossing).
    kl_part_ref[...] = kl.reshape(tr // _FOLD, _FOLD, LANES).sum(axis=0)
    reg_part_ref[...] = reg.reshape(tr // _FOLD, _FOLD, LANES).sum(axis=0)


def kl_loss(mu_q, logs_q, mu_p, logs_p, regularization=True, size_average=True,
            *, tile_rows=1024):
    """Returns (loss_tot, KL_loss, reg_loss) reduced (mean or sum) as f32 scalars."""
    if not regularization:
        # TODO(synk): reference returns reg_loss=None in that branch; its forward then
        # crashes in PyTorch too, so only regularization=True is supported.
        raise NotImplementedError("regularization=False is not supported")

    n = int(mu_q.size)
    assert n > 0
    rows_raw = -(-n // LANES)                                   # ceil(n / 128)
    rows8 = ((rows_raw + _FOLD - 1) // _FOLD) * _FOLD           # round up to sublane mult.
    tr = min(int(tile_rows), rows8)
    tr = ((tr + _FOLD - 1) // _FOLD) * _FOLD                    # keep (8,128) divisibility
    num_blocks = -(-rows8 // tr)
    rows = num_blocks * tr                                      # tr always divides rows
    total = rows * LANES

    def flat(x):
        # Keep the native dtype (e.g. bf16): halves HBM traffic vs a wrapper f32 cast;
        # the kernel upcasts per-tile. Zero padding contributes exactly 0 to kl & reg.
        x = jnp.ravel(x)
        if total != n:
            x = jnp.pad(x, (0, total - n))
        return x.reshape(rows, LANES)

    in_spec = pl.BlockSpec((tr, LANES), lambda i: (i, 0))
    out_spec = pl.BlockSpec((_FOLD, LANES), lambda i: (i, 0))
    out_shape = jax.ShapeDtypeStruct((num_blocks * _FOLD, LANES), jnp.float32)

    kl_part, reg_part = pl.pallas_call(
        _kl_loss_kernel,
        out_shape=(out_shape, out_shape),
        grid_spec=pltpu.PrefetchScalarGridSpec(
            num_scalar_prefetch=0,
            grid=(num_blocks,),
            in_specs=[in_spec, in_spec, in_spec, in_spec],
            out_specs=(out_spec, out_spec),
        ),
        compiler_params=pltpu.CompilerParams(
            # fully parallel axis: no cross-step accumulator, so v7x's 2 TCs can
            # each take half the row range; harmless no-op on v5e/v6e.
            dimension_semantics=("parallel",),
            vmem_limit_bytes=32 * 1024 * 1024,   # fits v7x (64 MiB phys) and below
        ),
    )(flat(mu_q), flat(logs_q), flat(mu_p), flat(logs_p))

    # Tiny final reduction (num_blocks*8 x 128 f32) done in plain XLA.
    kl_sum = jnp.sum(kl_part)
    reg_sum = jnp.sum(reg_part)
    tot_sum = kl_sum + 4.0 * reg_sum
    scale = (1.0 / float(n)) if size_average else 1.0
    return tot_sum * scale, kl_sum * scale, reg_sum * scale


def _reference(mu_q, logs_q, mu_p, logs_p, size_average=True):
    mu_q, logs_q, mu_p, logs_p = (jnp.asarray(t, jnp.float32)
                                  for t in (mu_q, logs_q, mu_p, logs_p))
    kl = (logs_p - logs_q) + 0.5 * (jnp.exp(2.0 * logs_q) + (mu_q - mu_p) ** 2) \
        * jnp.exp(-2.0 * logs_p) - 0.5
    reg = (jnp.maximum(logs_q, LOG_EPS) - jnp.maximum(logs_p, LOG_EPS)) ** 2
    tot = kl + 4.0 * reg
    red = jnp.mean if size_average else jnp.sum
    return red(tot), red(kl), red(reg)


def _check(out, ref, rtol):
    for o, r in zip(out, ref):
        assert abs(float(o) - float(r)) < rtol * max(1.0, abs(float(r))), (o, r)


if __name__ == "__main__":
    key = jax.random.PRNGKey(0)

    # Small NCHW-style shapes consistent with the (shape-agnostic, elementwise) module.
    B, C, H, W = 2, 4, 16, 16  # 2*4*16*16 = 2048 elements
    k1, k2, k3, k4 = jax.random.split(key, 4)
    mu_q = jax.random.normal(k1, (B, C, H, W), jnp.float32)
    logs_q = 0.5 * jax.random.normal(k2, (B, C, H, W), jnp.float32) - 1.0
    mu_p = jax.random.normal(k3, (B, C, H, W), jnp.float32)
    logs_p = 0.5 * jax.random.normal(k4, (B, C, H, W), jnp.float32) - 1.0

    out = jax.block_until_ready(
        kl_loss(mu_q, logs_q, mu_p, logs_p, regularization=True, size_average=True))
    _check(out, _reference(mu_q, logs_q, mu_p, logs_p, size_average=True), 1e-4)

    out_s = jax.block_until_ready(
        kl_loss(mu_q, logs_q, mu_p, logs_p, regularization=True, size_average=False))
    _check(out_s, _reference(mu_q, logs_q, mu_p, logs_p, size_average=False), 1e-3)

    # Ragged shape (exercises the zero-padding path: 210 elements, not a mult. of 128).
    shp = (2, 3, 7, 5)
    k5, k6, k7, k8 = jax.random.split(jax.random.fold_in(key, 1), 4)
    mu_q2 = jax.random.normal(k5, shp, jnp.float32)
    logs_q2 = 0.5 * jax.random.normal(k6, shp, jnp.float32) - 1.0
    mu_p2 = jax.random.normal(k7, shp, jnp.float32)
    logs_p2 = 0.5 * jax.random.normal(k8, shp, jnp.float32) - 1.0
    out_r = jax.block_until_ready(
        kl_loss(mu_q2, logs_q2, mu_p2, logs_p2, regularization=True, size_average=True))
    _check(out_r, _reference(mu_q2, logs_q2, mu_p2, logs_p2, size_average=True), 1e-4)

    print("KERNEL_OK")
</pallas_src>

<mosaic_0001>
module attributes {stable_mosaic.version = 11 : i64} {
  func.func @_kl_loss_kernel(%arg0: i32, %arg1: memref<16x128xf32, #tpu.memory_space<vmem>>, %arg2: memref<16x128xf32, #tpu.memory_space<vmem>>, %arg3: memref<16x128xf32, #tpu.memory_space<vmem>>, %arg4: memref<16x128xf32, #tpu.memory_space<vmem>>, %arg5: memref<8x128xf32, #tpu.memory_space<vmem>>, %arg6: memref<8x128xf32, #tpu.memory_space<vmem>>) attributes {dimension_semantics = [#tpu.dimension_semantics<parallel>], iteration_bounds = array<i64: 1>, scalar_prefetch = 0 : i64, scratch_operands = 0 : i64, tpu.core_type = #tpu.core_type<tc>, window_params = [{transform_indices = @transform_0, window_bounds = array<i64: 16, 128>}, {transform_indices = @transform_1, window_bounds = array<i64: 16, 128>}, {transform_indices = @transform_2, window_bounds = array<i64: 16, 128>}, {transform_indices = @transform_3, window_bounds = array<i64: 16, 128>}, {transform_indices = @transform_4, window_bounds = array<i64: 8, 128>}, {transform_indices = @transform_5, window_bounds = array<i64: 8, 128>}]} {
    %c0 = arith.constant 0 : index
    %c0_0 = arith.constant 0 : index
    %0 = vector.load %arg1[%c0, %c0_0] : memref<16x128xf32, #tpu.memory_space<vmem>>, vector<16x128xf32>
    %c0_1 = arith.constant 0 : index
    %c0_2 = arith.constant 0 : index
    %1 = vector.load %arg2[%c0_1, %c0_2] : memref<16x128xf32, #tpu.memory_space<vmem>>, vector<16x128xf32>
    %c0_3 = arith.constant 0 : index
    %c0_4 = arith.constant 0 : index
    %2 = vector.load %arg3[%c0_3, %c0_4] : memref<16x128xf32, #tpu.memory_space<vmem>>, vector<16x128xf32>
    %c0_5 = arith.constant 0 : index
    %c0_6 = arith.constant 0 : index
    %3 = vector.load %arg4[%c0_5, %c0_6] : memref<16x128xf32, #tpu.memory_space<vmem>>, vector<16x128xf32>
    %4 = arith.subf %0, %2 : vector<16x128xf32>
    %5 = arith.subf %3, %1 : vector<16x128xf32>
    %cst = arith.constant 2.000000e+00 : f32
    %6 = vector.broadcast %cst : f32 to vector<16x128xf32>
    %7 = arith.mulf %6, %1 : vector<16x128xf32>
    %8 = math.exp %7 : vector<16x128xf32>
    %9 = arith.mulf %4, %4 : vector<16x128xf32>
    %10 = arith.addf %8, %9 : vector<16x128xf32>
    %cst_7 = arith.constant 5.000000e-01 : f32
    %11 = vector.broadcast %cst_7 : f32 to vector<16x128xf32>
    %12 = arith.mulf %11, %10 : vector<16x128xf32>
    %cst_8 = arith.constant -2.000000e+00 : f32
    %13 = vector.broadcast %cst_8 : f32 to vector<16x128xf32>
    %14 = arith.mulf %13, %3 : vector<16x128xf32>
    %15 = math.exp %14 : vector<16x128xf32>
    %16 = arith.mulf %12, %15 : vector<16x128xf32>
    %17 = arith.addf %5, %16 : vector<16x128xf32>
    %cst_9 = arith.constant 5.000000e-01 : f32
    %18 = vector.broadcast %cst_9 : f32 to vector<16x128xf32>
    %19 = arith.subf %17, %18 : vector<16x128xf32>
    %cst_10 = arith.constant -6.000000e+00 : f32
    %20 = vector.broadcast %cst_10 : f32 to vector<16x128xf32>
    %21 = arith.maximumf %1, %20 : vector<16x128xf32>
    %cst_11 = arith.constant -6.000000e+00 : f32
    %22 = vector.broadcast %cst_11 : f32 to vector<16x128xf32>
    %23 = arith.maximumf %3, %22 : vector<16x128xf32>
    %24 = arith.subf %21, %23 : vector<16x128xf32>
    %25 = arith.mulf %24, %24 : vector<16x128xf32>
    %26 = vector.shape_cast %19 : vector<16x128xf32> to vector<2x8x128xf32>
    %cst_12 = arith.constant dense<0.000000e+00> : vector<8x128xf32>
    %27 = vector.multi_reduction <add>, %26, %cst_12 [0] : vector<2x8x128xf32> to vector<8x128xf32>
    %c0_13 = arith.constant 0 : index
    %c0_14 = arith.constant 0 : index
    %28 = vector.load %arg5[%c0_13, %c0_14] : memref<8x128xf32, #tpu.memory_space<vmem>>, vector<8x128xf32>
    tpu.vector_store %arg5[%c0_13, %c0_14], %27 {strides = array<i32>} : memref<8x128xf32, #tpu.memory_space<vmem>>, vector<8x128xf32>,
    %29 = vector.shape_cast %25 : vector<16x128xf32> to vector<2x8x128xf32>
    %cst_15 = arith.constant dense<0.000000e+00> : vector<8x128xf32>
    %30 = vector.multi_reduction <add>, %29, %cst_15 [0] : vector<2x8x128xf32> to vector<8x128xf32>
    %c0_16 = arith.constant 0 : index
    %c0_17 = arith.constant 0 : index
    %31 = vector.load %arg6[%c0_16, %c0_17] : memref<8x128xf32, #tpu.memory_space<vmem>>, vector<8x128xf32>
    tpu.vector_store %arg6[%c0_16, %c0_17], %30 {strides = array<i32>} : memref<8x128xf32, #tpu.memory_space<vmem>>, vector<8x128xf32>,
    return
  }
  func.func @transform_0(%arg0: i32) -> (i32, i32) {
    %c0_i32 = arith.constant 0 : i32
    %c0_i32_0 = arith.constant 0 : i32
    return %arg0, %c0_i32 : i32, i32
  }
  func.func @transform_1(%arg0: i32) -> (i32, i32) {
    %c0_i32 = arith.constant 0 : i32
    %c0_i32_0 = arith.constant 0 : i32
    return %arg0, %c0_i32 : i32, i32
  }
  func.func @transform_2(%arg0: i32) -> (i32, i32) {
    %c0_i32 = arith.constant 0 : i32
    %c0_i32_0 = arith.constant 0 : i32
    return %arg0, %c0_i32 : i32, i32
  }
  func.func @transform_3(%arg0: i32) -> (i32, i32) {
    %c0_i32 = arith.constant 0 : i32
    %c0_i32_0 = arith.constant 0 : i32
    return %arg0, %c0_i32 : i32, i32
  }
  func.func @transform_4(%arg0: i32) -> (i32, i32) {
    %c0_i32 = arith.constant 0 : i32
    %c0_i32_0 = arith.constant 0 : i32
    return %arg0, %c0_i32 : i32, i32
  }
  func.func @transform_5(%arg0: i32) -> (i32, i32) {
    %c0_i32 = arith.constant 0 : i32
    %c0_i32_0 = arith.constant 0 : i32
    return %arg0, %c0_i32 : i32, i32
  }
}

</mosaic_0001>

<bundles_post_ra>
// kernel: tpu_custom_call.1
= control target key start
LH: loop header
LB: loop body
LE: loop exit
PB: predicated region body
PF: predicated region fallthrough
CT: control target
= control target key end

     0   :  { %11 = vsyncpa [#allocation3], 0  ;;  %s395_s0 = inlined_call_operand.hbm [shape: f32[16,128], index: 0, kind: input, shape index: {}]   ;;  %s396_s1 = inlined_call_operand.hbm [shape: f32[16,128], index: 1, kind: input, shape index: {}]   ;;  %s397_s2 = inlined_call_operand.hbm [shape: f32[16,128], index: 2, kind: input, shape index: {}]   ;;  %s398_s3 = inlined_call_operand.hbm [shape: f32[16,128], index: 3, kind: input, shape index: {}]   ;;  %s399_s4 = inlined_call_operand.hbm [shape: f32[8,128], index: 4, kind: output, shape index: {0}]   ;;  %s400_s5 = inlined_call_operand.hbm [shape: f32[8,128], index: 5, kind: output, shape index: {1}]  }
   0x1   :  { %12 = vsyncpa [#allocation6], 0 }
   0x2   :  { %13 = vsyncpa [#allocation9], 0 }
   0x3   :  { %14 = vsyncpa [#allocation4], 0 }
   0x4   :  { %15 = vsyncpa [#allocation12], 0  ;;  %s33_s20 = sshll.u32 %s396_s1, 4  ;;  %s339_s21 = smov [#allocation5]   ;;  %s34_s20 = int_to_ptr.hbm [resolvable:$true] %s33_s20 }
   0x5   :  { %s35_s22 = sshll.u32 %s339_s21, 4  ;;  %s20_s25 = sshll.u32 %s395_s0, 4  ;;  %s36_s22 = int_to_ptr.vmem [resolvable:$true] %s35_s22  ;;  %s21_s25 = int_to_ptr.hbm [resolvable:$true] %s20_s25 }
   0x6   :  { %s340_s26 = smov 128   ;;  %s341_s27 = smov 8  }
   0x7   :  { %41 = dma.hbm_to_vmem [thread:$0]  %s34_s20, 256, %s36_s22, [#allocation6], %s340_s26, %s340_s26, %s341_s27  }
   0x8   :  { %s342_s28 = smov [#allocation2]   ;;  %s46_s7 = sshll.u32 %s397_s2, 4  ;;  %s47_s7 = int_to_ptr.hbm [resolvable:$true] %s46_s7 }
   0x9   :  { %s22_s29 = sshll.u32 %s342_s28, 4  ;;  %s59_s9 = sshll.u32 %s398_s3, 4  ;;  %s23_s29 = int_to_ptr.vmem [resolvable:$true] %s22_s29  ;;  %s60_s9 = int_to_ptr.hbm [resolvable:$true] %s59_s9 }
   0xa   :  { %28 = dma.hbm_to_vmem [thread:$0]  %s21_s25, 256, %s23_s29, [#allocation3], %s340_s26, %s340_s26, %s341_s27  }
   0xb   :  { %s343_s10 = smov [#allocation7]   ;;  %s344_s0 = smov [#allocation8]  }
   0xc   :  { %s48_s11 = sshll.u32 %s343_s10, 4  ;;  %s61_s12 = sshll.u32 %s344_s0, 4  ;;  %s49_s11 = int_to_ptr.vmem [resolvable:$true] %s48_s11  ;;  %s62_s12 = int_to_ptr.vmem [resolvable:$true] %s61_s12 }
   0xd   :  { %54 = dma.hbm_to_vmem [thread:$0]  %s47_s7, 256, %s49_s11, [#allocation6], %s340_s26, %s340_s26, %s341_s27  }
   0xe   :  { %67 = dma.hbm_to_vmem [thread:$0]  %s60_s9, 256, %s62_s12, [#allocation9], %s340_s26, %s340_s26, %s341_s27  }
   0xf   :  { %329 = dma.done.wait [#allocation3], 256  }
  0x10   :  { %330 = vsyncadd [#allocation3], 4294967040 }
  0x11   :  { %331 = dma.done.wait [#allocation6], 512  }
  0x12   :  { %332 = vsyncadd [#allocation6], 4294966784 }
  0x13   :  { %333 = dma.done.wait [#allocation9], 256  }
  0x14   :  { %334 = vsyncadd [#allocation9], 4294967040  ;;  %v84_v0 = vld [vmem:[#allocation2] sm:$0xff]  ;;  %v85_v1 = vld [vmem:[#allocation2 + $0x8] sm:$0xff]  ;;  %s345_s2 = smov [#allocation11]   ;;  %s150_s15 = sshll.u32 %s400_s5, 4  ;;  %s151_s15 = int_to_ptr.hbm [resolvable:$true] %s150_s15 }
  0x15   :  { %v86_v2 = vld [vmem:[#allocation5] sm:$0xff]  ;;  %v87_v3 = vld [vmem:[#allocation5 + $0x8] sm:$0xff]  ;;  %v88_v4 = vld [vmem:[#allocation7] sm:$0xff]  ;;  %s148_s3 = sshll.u32 %s345_s2, 4  ;;  %s346_s5 = smov [#allocation10]   ;;  %s149_s3 = int_to_ptr.vmem [resolvable:$true] %s148_s3 }
  0x16   :  { %v89_v5 = vld [vmem:[#allocation7 + $0x8] sm:$0xff]  ;;  %v96_v6 = vmul.f32 2.0, %v86_v2  ;;  %v90_v7 = vld [vmem:[#allocation8] sm:$0xff]  ;;  %v91_v8 = vld [vmem:[#allocation8 + $0x8] sm:$0xff]  ;;  %v97_v9 = vmul.f32 2.0, %v87_v3  ;;  %v120_v12 = vmax.f32 %v86_v2, -6.0  ;;  %v92_v14 = vsub.f32 %v84_v0, %v88_v4 }
  0x17   :  { %v108_v11 = vmul.f32 -2.0, %v90_v7  ;;  %v121_v13 = vmax.f32 %v87_v3, -6.0  ;;  %v93_v15 = vsub.f32 %v85_v1, %v89_v5  ;;  %v109_v17 = vmul.f32 -2.0, %v91_v8  ;;  %s137_s16 = sshll.u32 %s346_s5, 4  ;;  %s139_s19 = sshll.u32 %s399_s4, 4  ;;  %s138_s16 = int_to_ptr.vmem [resolvable:$true] %s137_s16  ;;  %s140_s19 = int_to_ptr.hbm [resolvable:$true] %s139_s19 }
  0x18   :  { %v98_v10 = vmul.f32 1.442695, %v96_v6  ;;  %v100_v16 = vmul.f32 1.442695, %v97_v9  ;;  %v122_v19 = vmax.f32 %v90_v7, -6.0  ;;  %v123_v20 = vmax.f32 %v91_v8, -6.0 }
  0x19   :  { %v110_v18 = vmul.f32 1.442695, %v108_v11  ;;  %v112_v21 = vmul.f32 1.442695, %v109_v17  ;;  %v102_v24 = vmul.f32 %v92_v14, %v92_v14  ;;  %v103_v25 = vmul.f32 %v93_v15, %v93_v15 }
  0x1a   :  { %177 = vpow2.f32 %v98_v10  ;;  %v124_v22 = vsub.f32 %v120_v12, %v122_v19  ;;  %v125_v23 = vsub.f32 %v121_v13, %v123_v20  ;;  %v94_v35 = vsub.f32 %v90_v7, %v86_v2 }
  0x1b   :  { %179 = vpow2.f32 %v100_v16  ;;  %v95_v37 = vsub.f32 %v91_v8, %v87_v3 }
  0x1c   :  { %181 = vpow2.f32 %v110_v18  ;;  %v126_v26 = vmul.f32 %v124_v22, %v124_v22  ;;  %v127_v27 = vmul.f32 %v125_v23, %v125_v23 }
  0x1d   :  { %183 = vpow2.f32 %v112_v21 }
  0x1e   :  { %v130_v29 = vadd.f32 %v127_v27, %v126_v26 }
  0x20   :  { %v178_v28 = vpop.eup %177  ;;  %131 = vst [vmem:[#allocation11] sm:$0xff] %v130_v29 }
  0x21   :  { %v180_v30 = vpop.eup %179  ;;  %v104_v31 = vadd.f32 %v178_v28, %v102_v24  ;;  %153 = dma.vmem_to_hbm [thread:$0]  %s149_s3, 128, %s151_s15, [#allocation12]  }
  0x22   :  { %v182_v32 = vpop.eup %181  ;;  %v105_v33 = vadd.f32 %v180_v30, %v103_v25 }
  0x23   :  { %v184_v34 = vpop.eup %183  ;;  %v106_v36 = vmul.f32 0.5, %v104_v31 }
  0x24   :  { %v107_v38 = vmul.f32 0.5, %v105_v33 }
  0x25   :  { %v114_v39 = vmul.f32 %v182_v32, %v106_v36 }
  0x26   :  { %v115_v40 = vmul.f32 %v184_v34, %v107_v38 }
  0x27   :  { %v116_v41 = vadd.f32 %v114_v39, %v94_v35 }
  0x28   :  { %v117_v42 = vadd.f32 %v115_v40, %v95_v37 }
  0x29   :  { %v167_v43 = vadd.f32 -0.5, %v116_v41 }
  0x2a   :  { %v168_v44 = vadd.f32 -0.5, %v117_v42 }
  0x2c   :  { %v128_v45 = vadd.f32 %v168_v44, %v167_v43 }
  0x2e   :  { %129 = vst [vmem:[#allocation10] sm:$0xff] %v128_v45 }
  0x2f   :  { %142 = dma.vmem_to_hbm [thread:$0]  %s138_s16, 128, %s140_s19, [#allocation4]  }
  0x30   :  { %335 = dma.done.wait [#allocation4], 128  }
  0x31   :  { %336 = vsyncadd [#allocation4], 4294967168 }
  0x32   :  { %337 = dma.done.wait [#allocation12], 128  }
  0x33   :  { %338 = vsyncadd [#allocation12], 4294967168 }
  0x34   :  { %162 = vsyncpa [#allocation3], 1 }
  0x35   :  { %163 = vsyncpa [#allocation6], 1 }
  0x36   :  { %164 = vsyncpa [#allocation9], 1 }
  0x37   :  { %165 = vsyncpa [#allocation4], 1 }
  0x38   :  { %166 = vsyncpa [#allocation12], 1 }

</bundles_post_ra>
